<compile_context>
chip_gen: v7x
topology: tpu7x:2x2x1
jax: 0.10.0
libtpu: 0.0.40
codegen_flags: <defaults>
</compile_context>

<pallas_src>
import jax
import jax.numpy as jnp
from jax.experimental import pallas as pl
from jax.experimental.pallas import tpu as pltpu


# ----------------------------------------------------------------------------
# kernel
# ----------------------------------------------------------------------------
def flow_kernel(z_ref, masks_ref, w1_ref, b1_ref, w2_ref, b2_ref,
                z_out_ref, logdet_ref):
    L = masks_ref.shape[0]
    d_pad = z_ref.shape[1]

    z = z_ref[...]                                    # (BT, Dp) f32
    logdet = jnp.zeros((z.shape[0], 1), jnp.float32)  # per-sample accumulator

    # L is small and static -> unrolled Python loop (LLO sees straight-line code).
    for l in range(L):
        mask = masks_ref[l]                           # (1, Dp) f32
        one_minus = 1.0 - mask                        # hoisted once per layer
        zm = z * mask                                 # conditioner input

        # fused conditioner: one (BT,Dp)x(Dp,2H) matmul (-> [h_s | h_t]),
        # then one (BT,2H)x(2H,2Dp) block-diagonal matmul (-> [s_pre | t]).
        h = jnp.maximum(
            jnp.dot(zm.astype(jnp.bfloat16), w1_ref[l],
                    preferred_element_type=jnp.float32) + b1_ref[l],
            0.0)
        st = jnp.dot(h.astype(jnp.bfloat16), w2_ref[l],
                     preferred_element_type=jnp.float32) + b2_ref[l]
        s = jnp.tanh(st[:, :d_pad])                   # scale (EUP tanh, f32)
        t = st[:, d_pad:]                             # translation

        z = zm + one_minus * (z * jnp.exp(s) + t)
        logdet = logdet + jnp.sum(one_minus * s, axis=-1, keepdims=True)

    # lane-dense stores: z is (BT, 128-padded); logdet broadcast across lanes.
    z_out_ref[...] = z
    logdet_ref[...] = jnp.broadcast_to(logdet, logdet_ref.shape)


# ----------------------------------------------------------------------------
# wrapper
# ----------------------------------------------------------------------------
def _round_up(x, m):
    return ((x + m - 1) // m) * m


def flow_forward(z, masks, ws1, bs1, ws2, bs2, wt1, bt1, wt2, bt2,
                 *, max_batch_tile=256):
    """Flow.forward(z) -> (z_L, sum_log_det_J) with a single pallas_call."""
    B, D = z.shape
    L, _, H = ws1.shape

    d_pad = _round_up(D, 128)                 # lane-dense feature dimension
    BT = min(max_batch_tile, _round_up(B, 8)) # batch tile (sublane granule)
    B_pad = _round_up(B, BT)

    f32, bf16 = jnp.float32, jnp.bfloat16

    # ---- host-side parameter packing (pure layout plumbing) -----------------
    # padded mask lanes = 1.0 so padded features pass through as zeros and
    # contribute nothing to the log-determinant.
    masks_p = jnp.concatenate(
        [masks.astype(f32), jnp.ones((L, 1, d_pad - D), f32)], axis=-1)

    # first layer: W1 = [Ws1 | Wt1], zero rows for padded features.
    w1 = jnp.pad(jnp.concatenate([ws1, wt1], axis=-1),
                 ((0, 0), (0, d_pad - D), (0, 0))).astype(bf16)      # (L,Dp,2H)
    b1 = jnp.concatenate([bs1, bt1], axis=-1).astype(f32)            # (L,1,2H)

    # second layer: block-diagonal so [h_s|h_t] @ W2 = [s_pre | t].
    ws2_p = jnp.pad(ws2, ((0, 0), (0, 0), (0, d_pad - D)))
    wt2_p = jnp.pad(wt2, ((0, 0), (0, 0), (0, d_pad - D)))
    zeros_hd = jnp.zeros((L, H, d_pad), ws2.dtype)
    w2 = jnp.concatenate(
        [jnp.concatenate([ws2_p, zeros_hd], axis=-1),
         jnp.concatenate([zeros_hd, wt2_p], axis=-1)],
        axis=1).astype(bf16)                                          # (L,2H,2Dp)
    b2 = jnp.concatenate(
        [jnp.pad(bs2, ((0, 0), (0, 0), (0, d_pad - D))),
         jnp.pad(bt2, ((0, 0), (0, 0), (0, d_pad - D)))],
        axis=-1).astype(f32)                                          # (L,1,2Dp)

    z_p = jnp.pad(z.astype(f32), ((0, B_pad - B), (0, d_pad - D)))    # (Bp,Dp)

    def full3(arr):  # whole (tiny) parameter array resident in VMEM
        return pl.BlockSpec(arr.shape, lambda b: (0, 0, 0))

    z_out, logdet = pl.pallas_call(
        flow_kernel,
        out_shape=(jax.ShapeDtypeStruct((B_pad, d_pad), f32),
                   jax.ShapeDtypeStruct((B_pad, 128), f32)),
        grid_spec=pltpu.PrefetchScalarGridSpec(
            num_scalar_prefetch=0,
            grid=(B_pad // BT,),                       # batch tiles only
            in_specs=[pl.BlockSpec((BT, d_pad), lambda b: (b, 0)),   # z
                      full3(masks_p),                                # masks
                      full3(w1), full3(b1),                          # fused L1
                      full3(w2), full3(b2)],                         # fused L2
            out_specs=[pl.BlockSpec((BT, d_pad), lambda b: (b, 0)),
                       pl.BlockSpec((BT, 128), lambda b: (b, 0))]),
        compiler_params=pltpu.CompilerParams(
            dimension_semantics=("parallel",),        # batch is truly parallel
            vmem_limit_bytes=32 * 1024 * 1024),       # ample headroom on v7x
    )(z_p, masks_p, w1, b1, w2, b2)

    return z_out[:B, :D], logdet[:B, 0]


# ----------------------------------------------------------------------------
# pure-JAX references
# ----------------------------------------------------------------------------
def flow_forward_ref_f32(z, masks, ws1, bs1, ws2, bs2, wt1, bt1, wt2, bt2):
    """Full-f32 reference (original PyTorch-module math)."""
    L = ws1.shape[0]
    logdet = jnp.zeros((z.shape[0],), jnp.float32)
    for l in range(L):
        mask = masks[l]
        zm = z * mask
        h_s = jnp.maximum(zm @ ws1[l] + bs1[l], 0.0)
        s = jnp.tanh(h_s @ ws2[l] + bs2[l])
        h_t = jnp.maximum(zm @ wt1[l] + bt1[l], 0.0)
        t = h_t @ wt2[l] + bt2[l]
        z = zm + (1.0 - mask) * (z * jnp.exp(s) + t)
        logdet = logdet + jnp.sum((1.0 - mask) * s, axis=-1)
    return z, logdet


def flow_forward_ref_mxu(z, masks, ws1, bs1, ws2, bs2, wt1, bt1, wt2, bt2):
    """Reference mirroring the kernel numerics: bf16 matmul operands, f32 accum."""
    L = ws1.shape[0]
    bf16, f32 = jnp.bfloat16, jnp.float32
    logdet = jnp.zeros((z.shape[0],), f32)
    for l in range(L):
        mask = masks[l]
        zm = z * mask
        zmb = zm.astype(bf16)
        h_s = jnp.maximum(jnp.dot(zmb, ws1[l].astype(bf16),
                                  preferred_element_type=f32) + bs1[l], 0.0)
        h_t = jnp.maximum(jnp.dot(zmb, wt1[l].astype(bf16),
                                  preferred_element_type=f32) + bt1[l], 0.0)
        s = jnp.tanh(jnp.dot(h_s.astype(bf16), ws2[l].astype(bf16),
                             preferred_element_type=f32) + bs2[l])
        t = jnp.dot(h_t.astype(bf16), wt2[l].astype(bf16),
                    preferred_element_type=f32) + bt2[l]
        z = zm + (1.0 - mask) * (z * jnp.exp(s) + t)
        logdet = logdet + jnp.sum((1.0 - mask) * s, axis=-1)
    return z, logdet


# ----------------------------------------------------------------------------
if __name__ == "__main__":
    # small shapes: batch=8, feature dim D=16, hidden H=32, L=4 coupling layers
    B, D, H, L = 8, 16, 32, 4

    key = jax.random.PRNGKey(0)
    keys = jax.random.split(key, 6)

    z = jax.random.normal(keys[0], (B, D), jnp.float32)

    # alternating binary masks (checkerboard over feature dim, flipped per layer)
    base_mask = (jnp.arange(D) % 2).astype(jnp.float32)             # (D,)
    masks = jnp.stack([base_mask if l % 2 == 0 else 1.0 - base_mask
                       for l in range(L)])[:, None, :]              # (L,1,D)

    scale = 0.1
    ws1 = scale * jax.random.normal(keys[1], (L, D, H), jnp.float32)
    bs1 = jnp.zeros((L, 1, H), jnp.float32)
    ws2 = scale * jax.random.normal(keys[2], (L, H, D), jnp.float32)
    bs2 = jnp.zeros((L, 1, D), jnp.float32)
    wt1 = scale * jax.random.normal(keys[3], (L, D, H), jnp.float32)
    bt1 = jnp.zeros((L, 1, H), jnp.float32)
    wt2 = scale * jax.random.normal(keys[4], (L, H, D), jnp.float32)
    bt2 = jnp.zeros((L, 1, D), jnp.float32)

    params = (masks, ws1, bs1, ws2, bs2, wt1, bt1, wt2, bt2)

    z_out, sum_log_det = flow_forward(z, *params)
    jax.block_until_ready((z_out, sum_log_det))

    # exact-math check (same bf16-operand / f32-accumulate numerics)
    z_mxu, ld_mxu = flow_forward_ref_mxu(z, *params)
    assert jnp.allclose(z_out, z_mxu, atol=1e-3, rtol=1e-3), \
        f"z mismatch: {jnp.max(jnp.abs(z_out - z_mxu))}"
    assert jnp.allclose(sum_log_det, ld_mxu, atol=1e-3, rtol=1e-3), \
        f"logdet mismatch: {jnp.max(jnp.abs(sum_log_det - ld_mxu))}"

    # loose sanity check against the full-f32 (original-module) math;
    # slack accounts for bf16 weight quantization on the MXU.
    z_f32, ld_f32 = flow_forward_ref_f32(z, *params)
    assert jnp.allclose(z_out, z_f32, atol=0.15, rtol=0.0)
    assert jnp.allclose(sum_log_det, ld_f32, atol=0.15, rtol=0.0)

    # TODO(synk): Flow.inverse / log_prob / sample / loss need the host-side
    # torch.distributions base object; only forward() is kernelized here.
    print("KERNEL_OK")
</pallas_src>

<mosaic_0001>
module attributes {stable_mosaic.version = 11 : i64} {
  func.func @flow_kernel(%arg0: i32, %arg1: memref<8x128xf32, #tpu.memory_space<vmem>>, %arg2: memref<4x1x128xf32, #tpu.memory_space<vmem>>, %arg3: memref<4x128x64xbf16, #tpu.memory_space<vmem>>, %arg4: memref<4x1x64xf32, #tpu.memory_space<vmem>>, %arg5: memref<4x64x256xbf16, #tpu.memory_space<vmem>>, %arg6: memref<4x1x256xf32, #tpu.memory_space<vmem>>, %arg7: memref<8x128xf32, #tpu.memory_space<vmem>>, %arg8: memref<8x128xf32, #tpu.memory_space<vmem>>) attributes {dimension_semantics = [#tpu.dimension_semantics<parallel>], iteration_bounds = array<i64: 1>, scalar_prefetch = 0 : i64, scratch_operands = 0 : i64, tpu.core_type = #tpu.core_type<tc>, window_params = [{transform_indices = @transform_0, window_bounds = array<i64: 8, 128>}, {pipeline_mode = #tpu.pipeline_mode<synchronous>, transform_indices = @transform_1, window_bounds = array<i64: 4, 1, 128>}, {pipeline_mode = #tpu.pipeline_mode<synchronous>, transform_indices = @transform_2, window_bounds = array<i64: 4, 128, 64>}, {pipeline_mode = #tpu.pipeline_mode<synchronous>, transform_indices = @transform_3, window_bounds = array<i64: 4, 1, 64>}, {pipeline_mode = #tpu.pipeline_mode<synchronous>, transform_indices = @transform_4, window_bounds = array<i64: 4, 64, 256>}, {pipeline_mode = #tpu.pipeline_mode<synchronous>, transform_indices = @transform_5, window_bounds = array<i64: 4, 1, 256>}, {transform_indices = @transform_6, window_bounds = array<i64: 8, 128>}, {transform_indices = @transform_7, window_bounds = array<i64: 8, 128>}]} {
    %c0 = arith.constant 0 : index
    %c0_0 = arith.constant 0 : index
    %0 = vector.load %arg1[%c0, %c0_0] : memref<8x128xf32, #tpu.memory_space<vmem>>, vector<8x128xf32>
    %cst = arith.constant 0.000000e+00 : f32
    %1 = vector.broadcast %cst : f32 to vector<8x1xf32>
    %c0_1 = arith.constant 0 : index
    %c0_2 = arith.constant 0 : index
    %c0_3 = arith.constant 0 : index
    %2 = vector.load %arg2[%c0_1, %c0_2, %c0_3] : memref<4x1x128xf32, #tpu.memory_space<vmem>>, vector<1x1x128xf32>
    %3 = vector.shape_cast %2 : vector<1x1x128xf32> to vector<1x128xf32>
    %cst_4 = arith.constant 1.000000e+00 : f32
    %4 = vector.broadcast %cst_4 : f32 to vector<1x128xf32>
    %5 = arith.subf %4, %3 : vector<1x128xf32>
    %6 = vector.broadcast %3 : vector<1x128xf32> to vector<8x128xf32>
    %7 = arith.mulf %0, %6 : vector<8x128xf32>
    %8 = arith.truncf %7 : vector<8x128xf32> to vector<8x128xbf16>
    %c0_5 = arith.constant 0 : index
    %c0_6 = arith.constant 0 : index
    %c0_7 = arith.constant 0 : index
    %9 = vector.load %arg3[%c0_5, %c0_6, %c0_7] : memref<4x128x64xbf16, #tpu.memory_space<vmem>>, vector<1x128x64xbf16>
    %10 = vector.shape_cast %9 : vector<1x128x64xbf16> to vector<128x64xbf16>
    %cst_8 = arith.constant dense<0.000000e+00> : vector<8x64xf32>
    %11 = tpu.matmul %8, %10, %cst_8 {dimension_numbers = #tpu.dot_dimension_numbers<[1], [0], [0], [1], [0, 0, 1, 1], [], []>} : vector<8x128xbf16>, vector<128x64xbf16>, vector<8x64xf32> -> vector<8x64xf32>
    %c0_9 = arith.constant 0 : index
    %c0_10 = arith.constant 0 : index
    %c0_11 = arith.constant 0 : index
    %12 = vector.load %arg4[%c0_9, %c0_10, %c0_11] : memref<4x1x64xf32, #tpu.memory_space<vmem>>, vector<1x1x64xf32>
    %13 = vector.shape_cast %12 : vector<1x1x64xf32> to vector<1x64xf32>
    %14 = vector.broadcast %13 : vector<1x64xf32> to vector<8x64xf32>
    %15 = arith.addf %11, %14 : vector<8x64xf32>
    %cst_12 = arith.constant 0.000000e+00 : f32
    %16 = vector.broadcast %cst_12 : f32 to vector<8x64xf32>
    %17 = arith.maximumf %15, %16 : vector<8x64xf32>
    %18 = arith.truncf %17 : vector<8x64xf32> to vector<8x64xbf16>
    %c0_13 = arith.constant 0 : index
    %c0_14 = arith.constant 0 : index
    %c0_15 = arith.constant 0 : index
    %19 = vector.load %arg5[%c0_13, %c0_14, %c0_15] : memref<4x64x256xbf16, #tpu.memory_space<vmem>>, vector<1x64x256xbf16>
    %20 = vector.shape_cast %19 : vector<1x64x256xbf16> to vector<64x256xbf16>
    %cst_16 = arith.constant dense<0.000000e+00> : vector<8x256xf32>
    %21 = tpu.matmul %18, %20, %cst_16 {dimension_numbers = #tpu.dot_dimension_numbers<[1], [0], [0], [1], [0, 0, 1, 1], [], []>} : vector<8x64xbf16>, vector<64x256xbf16>, vector<8x256xf32> -> vector<8x256xf32>
    %c0_17 = arith.constant 0 : index
    %c0_18 = arith.constant 0 : index
    %c0_19 = arith.constant 0 : index
    %22 = vector.load %arg6[%c0_17, %c0_18, %c0_19] : memref<4x1x256xf32, #tpu.memory_space<vmem>>, vector<1x1x256xf32>
    %23 = vector.shape_cast %22 : vector<1x1x256xf32> to vector<1x256xf32>
    %24 = vector.broadcast %23 : vector<1x256xf32> to vector<8x256xf32>
    %25 = arith.addf %21, %24 : vector<8x256xf32>
    %26 = vector.extract_strided_slice %25 {offsets = [0, 0], sizes = [8, 128], strides = [1, 1]} : vector<8x256xf32> to vector<8x128xf32>
    %27 = math.tanh %26 : vector<8x128xf32>
    %28 = vector.extract_strided_slice %25 {offsets = [0, 128], sizes = [8, 128], strides = [1, 1]} : vector<8x256xf32> to vector<8x128xf32>
    %29 = math.exp %27 : vector<8x128xf32>
    %30 = arith.mulf %0, %29 : vector<8x128xf32>
    %31 = arith.addf %30, %28 : vector<8x128xf32>
    %32 = vector.broadcast %5 : vector<1x128xf32> to vector<8x128xf32>
    %33 = arith.mulf %32, %31 : vector<8x128xf32>
    %34 = arith.addf %7, %33 : vector<8x128xf32>
    %35 = vector.broadcast %5 : vector<1x128xf32> to vector<8x128xf32>
    %36 = arith.mulf %35, %27 : vector<8x128xf32>
    %cst_20 = arith.constant dense<0.000000e+00> : vector<8xf32>
    %37 = vector.multi_reduction <add>, %36, %cst_20 [1] : vector<8x128xf32> to vector<8xf32>
    %38 = vector.shape_cast %37 : vector<8xf32> to vector<8x1xf32>
    %39 = arith.addf %1, %38 : vector<8x1xf32>
    %c1 = arith.constant 1 : index
    %c0_21 = arith.constant 0 : index
    %c0_22 = arith.constant 0 : index
    %40 = vector.load %arg2[%c1, %c0_21, %c0_22] : memref<4x1x128xf32, #tpu.memory_space<vmem>>, vector<1x1x128xf32>
    %41 = vector.shape_cast %40 : vector<1x1x128xf32> to vector<1x128xf32>
    %cst_23 = arith.constant 1.000000e+00 : f32
    %42 = vector.broadcast %cst_23 : f32 to vector<1x128xf32>
    %43 = arith.subf %42, %41 : vector<1x128xf32>
    %44 = vector.broadcast %41 : vector<1x128xf32> to vector<8x128xf32>
    %45 = arith.mulf %34, %44 : vector<8x128xf32>
    %46 = arith.truncf %45 : vector<8x128xf32> to vector<8x128xbf16>
    %c1_24 = arith.constant 1 : index
    %c0_25 = arith.constant 0 : index
    %c0_26 = arith.constant 0 : index
    %47 = vector.load %arg3[%c1_24, %c0_25, %c0_26] : memref<4x128x64xbf16, #tpu.memory_space<vmem>>, vector<1x128x64xbf16>
    %48 = vector.shape_cast %47 : vector<1x128x64xbf16> to vector<128x64xbf16>
    %cst_27 = arith.constant dense<0.000000e+00> : vector<8x64xf32>
    %49 = tpu.matmul %46, %48, %cst_27 {dimension_numbers = #tpu.dot_dimension_numbers<[1], [0], [0], [1], [0, 0, 1, 1], [], []>} : vector<8x128xbf16>, vector<128x64xbf16>, vector<8x64xf32> -> vector<8x64xf32>
    %c1_28 = arith.constant 1 : index
    %c0_29 = arith.constant 0 : index
    %c0_30 = arith.constant 0 : index
    %50 = vector.load %arg4[%c1_28, %c0_29, %c0_30] : memref<4x1x64xf32, #tpu.memory_space<vmem>>, vector<1x1x64xf32>
    %51 = vector.shape_cast %50 : vector<1x1x64xf32> to vector<1x64xf32>
    %52 = vector.broadcast %51 : vector<1x64xf32> to vector<8x64xf32>
    %53 = arith.addf %49, %52 : vector<8x64xf32>
    %cst_31 = arith.constant 0.000000e+00 : f32
    %54 = vector.broadcast %cst_31 : f32 to vector<8x64xf32>
    %55 = arith.maximumf %53, %54 : vector<8x64xf32>
    %56 = arith.truncf %55 : vector<8x64xf32> to vector<8x64xbf16>
    %c1_32 = arith.constant 1 : index
    %c0_33 = arith.constant 0 : index
    %c0_34 = arith.constant 0 : index
    %57 = vector.load %arg5[%c1_32, %c0_33, %c0_34] : memref<4x64x256xbf16, #tpu.memory_space<vmem>>, vector<1x64x256xbf16>
    %58 = vector.shape_cast %57 : vector<1x64x256xbf16> to vector<64x256xbf16>
    %cst_35 = arith.constant dense<0.000000e+00> : vector<8x256xf32>
    %59 = tpu.matmul %56, %58, %cst_35 {dimension_numbers = #tpu.dot_dimension_numbers<[1], [0], [0], [1], [0, 0, 1, 1], [], []>} : vector<8x64xbf16>, vector<64x256xbf16>, vector<8x256xf32> -> vector<8x256xf32>
    %c1_36 = arith.constant 1 : index
    %c0_37 = arith.constant 0 : index
    %c0_38 = arith.constant 0 : index
    %60 = vector.load %arg6[%c1_36, %c0_37, %c0_38] : memref<4x1x256xf32, #tpu.memory_space<vmem>>, vector<1x1x256xf32>
    %61 = vector.shape_cast %60 : vector<1x1x256xf32> to vector<1x256xf32>
    %62 = vector.broadcast %61 : vector<1x256xf32> to vector<8x256xf32>
    %63 = arith.addf %59, %62 : vector<8x256xf32>
    %64 = vector.extract_strided_slice %63 {offsets = [0, 0], sizes = [8, 128], strides = [1, 1]} : vector<8x256xf32> to vector<8x128xf32>
    %65 = math.tanh %64 : vector<8x128xf32>
    %66 = vector.extract_strided_slice %63 {offsets = [0, 128], sizes = [8, 128], strides = [1, 1]} : vector<8x256xf32> to vector<8x128xf32>
    %67 = math.exp %65 : vector<8x128xf32>
    %68 = arith.mulf %34, %67 : vector<8x128xf32>
    %69 = arith.addf %68, %66 : vector<8x128xf32>
    %70 = vector.broadcast %43 : vector<1x128xf32> to vector<8x128xf32>
    %71 = arith.mulf %70, %69 : vector<8x128xf32>
    %72 = arith.addf %45, %71 : vector<8x128xf32>
    %73 = vector.broadcast %43 : vector<1x128xf32> to vector<8x128xf32>
    %74 = arith.mulf %73, %65 : vector<8x128xf32>
    %cst_39 = arith.constant dense<0.000000e+00> : vector<8xf32>
    %75 = vector.multi_reduction <add>, %74, %cst_39 [1] : vector<8x128xf32> to vector<8xf32>
    %76 = vector.shape_cast %75 : vector<8xf32> to vector<8x1xf32>
    %77 = arith.addf %39, %76 : vector<8x1xf32>
    %c2 = arith.constant 2 : index
    %c0_40 = arith.constant 0 : index
    %c0_41 = arith.constant 0 : index
    %78 = vector.load %arg2[%c2, %c0_40, %c0_41] : memref<4x1x128xf32, #tpu.memory_space<vmem>>, vector<1x1x128xf32>
    %79 = vector.shape_cast %78 : vector<1x1x128xf32> to vector<1x128xf32>
    %cst_42 = arith.constant 1.000000e+00 : f32
    %80 = vector.broadcast %cst_42 : f32 to vector<1x128xf32>
    %81 = arith.subf %80, %79 : vector<1x128xf32>
    %82 = vector.broadcast %79 : vector<1x128xf32> to vector<8x128xf32>
    %83 = arith.mulf %72, %82 : vector<8x128xf32>
    %84 = arith.truncf %83 : vector<8x128xf32> to vector<8x128xbf16>
    %c2_43 = arith.constant 2 : index
    %c0_44 = arith.constant 0 : index
    %c0_45 = arith.constant 0 : index
    %85 = vector.load %arg3[%c2_43, %c0_44, %c0_45] : memref<4x128x64xbf16, #tpu.memory_space<vmem>>, vector<1x128x64xbf16>
    %86 = vector.shape_cast %85 : vector<1x128x64xbf16> to vector<128x64xbf16>
    %cst_46 = arith.constant dense<0.000000e+00> : vector<8x64xf32>
    %87 = tpu.matmul %84, %86, %cst_46 {dimension_numbers = #tpu.dot_dimension_numbers<[1], [0], [0], [1], [0, 0, 1, 1], [], []>} : vector<8x128xbf16>, vector<128x64xbf16>, vector<8x64xf32> -> vector<8x64xf32>
    %c2_47 = arith.constant 2 : index
    %c0_48 = arith.constant 0 : index
    %c0_49 = arith.constant 0 : index
    %88 = vector.load %arg4[%c2_47, %c0_48, %c0_49] : memref<4x1x64xf32, #tpu.memory_space<vmem>>, vector<1x1x64xf32>
    %89 = vector.shape_cast %88 : vector<1x1x64xf32> to vector<1x64xf32>
    %90 = vector.broadcast %89 : vector<1x64xf32> to vector<8x64xf32>
    %91 = arith.addf %87, %90 : vector<8x64xf32>
    %cst_50 = arith.constant 0.000000e+00 : f32
    %92 = vector.broadcast %cst_50 : f32 to vector<8x64xf32>
    %93 = arith.maximumf %91, %92 : vector<8x64xf32>
    %94 = arith.truncf %93 : vector<8x64xf32> to vector<8x64xbf16>
    %c2_51 = arith.constant 2 : index
    %c0_52 = arith.constant 0 : index
    %c0_53 = arith.constant 0 : index
    %95 = vector.load %arg5[%c2_51, %c0_52, %c0_53] : memref<4x64x256xbf16, #tpu.memory_space<vmem>>, vector<1x64x256xbf16>
    %96 = vector.shape_cast %95 : vector<1x64x256xbf16> to vector<64x256xbf16>
    %cst_54 = arith.constant dense<0.000000e+00> : vector<8x256xf32>
    %97 = tpu.matmul %94, %96, %cst_54 {dimension_numbers = #tpu.dot_dimension_numbers<[1], [0], [0], [1], [0, 0, 1, 1], [], []>} : vector<8x64xbf16>, vector<64x256xbf16>, vector<8x256xf32> -> vector<8x256xf32>
    %c2_55 = arith.constant 2 : index
    %c0_56 = arith.constant 0 : index
    %c0_57 = arith.constant 0 : index
    %98 = vector.load %arg6[%c2_55, %c0_56, %c0_57] : memref<4x1x256xf32, #tpu.memory_space<vmem>>, vector<1x1x256xf32>
    %99 = vector.shape_cast %98 : vector<1x1x256xf32> to vector<1x256xf32>
    %100 = vector.broadcast %99 : vector<1x256xf32> to vector<8x256xf32>
    %101 = arith.addf %97, %100 : vector<8x256xf32>
    %102 = vector.extract_strided_slice %101 {offsets = [0, 0], sizes = [8, 128], strides = [1, 1]} : vector<8x256xf32> to vector<8x128xf32>
    %103 = math.tanh %102 : vector<8x128xf32>
    %104 = vector.extract_strided_slice %101 {offsets = [0, 128], sizes = [8, 128], strides = [1, 1]} : vector<8x256xf32> to vector<8x128xf32>
    %105 = math.exp %103 : vector<8x128xf32>
    %106 = arith.mulf %72, %105 : vector<8x128xf32>
    %107 = arith.addf %106, %104 : vector<8x128xf32>
    %108 = vector.broadcast %81 : vector<1x128xf32> to vector<8x128xf32>
    %109 = arith.mulf %108, %107 : vector<8x128xf32>
    %110 = arith.addf %83, %109 : vector<8x128xf32>
    %111 = vector.broadcast %81 : vector<1x128xf32> to vector<8x128xf32>
    %112 = arith.mulf %111, %103 : vector<8x128xf32>
    %cst_58 = arith.constant dense<0.000000e+00> : vector<8xf32>
    %113 = vector.multi_reduction <add>, %112, %cst_58 [1] : vector<8x128xf32> to vector<8xf32>
    %114 = vector.shape_cast %113 : vector<8xf32> to vector<8x1xf32>
    %115 = arith.addf %77, %114 : vector<8x1xf32>
    %c3 = arith.constant 3 : index
    %c0_59 = arith.constant 0 : index
    %c0_60 = arith.constant 0 : index
    %116 = vector.load %arg2[%c3, %c0_59, %c0_60] : memref<4x1x128xf32, #tpu.memory_space<vmem>>, vector<1x1x128xf32>
    %117 = vector.shape_cast %116 : vector<1x1x128xf32> to vector<1x128xf32>
    %cst_61 = arith.constant 1.000000e+00 : f32
    %118 = vector.broadcast %cst_61 : f32 to vector<1x128xf32>
    %119 = arith.subf %118, %117 : vector<1x128xf32>
    %120 = vector.broadcast %117 : vector<1x128xf32> to vector<8x128xf32>
    %121 = arith.mulf %110, %120 : vector<8x128xf32>
    %122 = arith.truncf %121 : vector<8x128xf32> to vector<8x128xbf16>
    %c3_62 = arith.constant 3 : index
    %c0_63 = arith.constant 0 : index
    %c0_64 = arith.constant 0 : index
    %123 = vector.load %arg3[%c3_62, %c0_63, %c0_64] : memref<4x128x64xbf16, #tpu.memory_space<vmem>>, vector<1x128x64xbf16>
    %124 = vector.shape_cast %123 : vector<1x128x64xbf16> to vector<128x64xbf16>
    %cst_65 = arith.constant dense<0.000000e+00> : vector<8x64xf32>
    %125 = tpu.matmul %122, %124, %cst_65 {dimension_numbers = #tpu.dot_dimension_numbers<[1], [0], [0], [1], [0, 0, 1, 1], [], []>} : vector<8x128xbf16>, vector<128x64xbf16>, vector<8x64xf32> -> vector<8x64xf32>
    %c3_66 = arith.constant 3 : index
    %c0_67 = arith.constant 0 : index
    %c0_68 = arith.constant 0 : index
    %126 = vector.load %arg4[%c3_66, %c0_67, %c0_68] : memref<4x1x64xf32, #tpu.memory_space<vmem>>, vector<1x1x64xf32>
    %127 = vector.shape_cast %126 : vector<1x1x64xf32> to vector<1x64xf32>
    %128 = vector.broadcast %127 : vector<1x64xf32> to vector<8x64xf32>
    %129 = arith.addf %125, %128 : vector<8x64xf32>
    %cst_69 = arith.constant 0.000000e+00 : f32
    %130 = vector.broadcast %cst_69 : f32 to vector<8x64xf32>
    %131 = arith.maximumf %129, %130 : vector<8x64xf32>
    %132 = arith.truncf %131 : vector<8x64xf32> to vector<8x64xbf16>
    %c3_70 = arith.constant 3 : index
    %c0_71 = arith.constant 0 : index
    %c0_72 = arith.constant 0 : index
    %133 = vector.load %arg5[%c3_70, %c0_71, %c0_72] : memref<4x64x256xbf16, #tpu.memory_space<vmem>>, vector<1x64x256xbf16>
    %134 = vector.shape_cast %133 : vector<1x64x256xbf16> to vector<64x256xbf16>
    %cst_73 = arith.constant dense<0.000000e+00> : vector<8x256xf32>
    %135 = tpu.matmul %132, %134, %cst_73 {dimension_numbers = #tpu.dot_dimension_numbers<[1], [0], [0], [1], [0, 0, 1, 1], [], []>} : vector<8x64xbf16>, vector<64x256xbf16>, vector<8x256xf32> -> vector<8x256xf32>
    %c3_74 = arith.constant 3 : index
    %c0_75 = arith.constant 0 : index
    %c0_76 = arith.constant 0 : index
    %136 = vector.load %arg6[%c3_74, %c0_75, %c0_76] : memref<4x1x256xf32, #tpu.memory_space<vmem>>, vector<1x1x256xf32>
    %137 = vector.shape_cast %136 : vector<1x1x256xf32> to vector<1x256xf32>
    %138 = vector.broadcast %137 : vector<1x256xf32> to vector<8x256xf32>
    %139 = arith.addf %135, %138 : vector<8x256xf32>
    %140 = vector.extract_strided_slice %139 {offsets = [0, 0], sizes = [8, 128], strides = [1, 1]} : vector<8x256xf32> to vector<8x128xf32>
    %141 = math.tanh %140 : vector<8x128xf32>
    %142 = vector.extract_strided_slice %139 {offsets = [0, 128], sizes = [8, 128], strides = [1, 1]} : vector<8x256xf32> to vector<8x128xf32>
    %143 = math.exp %141 : vector<8x128xf32>
    %144 = arith.mulf %110, %143 : vector<8x128xf32>
    %145 = arith.addf %144, %142 : vector<8x128xf32>
    %146 = vector.broadcast %119 : vector<1x128xf32> to vector<8x128xf32>
    %147 = arith.mulf %146, %145 : vector<8x128xf32>
    %148 = arith.addf %121, %147 : vector<8x128xf32>
    %149 = vector.broadcast %119 : vector<1x128xf32> to vector<8x128xf32>
    %150 = arith.mulf %149, %141 : vector<8x128xf32>
    %cst_77 = arith.constant dense<0.000000e+00> : vector<8xf32>
    %151 = vector.multi_reduction <add>, %150, %cst_77 [1] : vector<8x128xf32> to vector<8xf32>
    %152 = vector.shape_cast %151 : vector<8xf32> to vector<8x1xf32>
    %153 = arith.addf %115, %152 : vector<8x1xf32>
    %c0_78 = arith.constant 0 : index
    %c0_79 = arith.constant 0 : index
    %154 = vector.load %arg7[%c0_78, %c0_79] : memref<8x128xf32, #tpu.memory_space<vmem>>, vector<8x128xf32>
    tpu.vector_store %arg7[%c0_78, %c0_79], %148 {strides = array<i32>} : memref<8x128xf32, #tpu.memory_space<vmem>>, vector<8x128xf32>,
    %155 = vector.shape_cast %153 : vector<8x1xf32> to vector<8x1xf32>
    %156 = vector.broadcast %155 : vector<8x1xf32> to vector<8x128xf32>
    %c0_80 = arith.constant 0 : index
    %c0_81 = arith.constant 0 : index
    %157 = vector.load %arg8[%c0_80, %c0_81] : memref<8x128xf32, #tpu.memory_space<vmem>>, vector<8x128xf32>
    tpu.vector_store %arg8[%c0_80, %c0_81], %156 {strides = array<i32>} : memref<8x128xf32, #tpu.memory_space<vmem>>, vector<8x128xf32>,
    return
  }
  func.func @transform_0(%arg0: i32) -> (i32, i32) {
    %c0_i32 = arith.constant 0 : i32
    %c0_i32_0 = arith.constant 0 : i32
    return %arg0, %c0_i32 : i32, i32
  }
  func.func @transform_1(%arg0: i32) -> (i32, i32, i32) {
    %c0_i32 = arith.constant 0 : i32
    %c0_i32_0 = arith.constant 0 : i32
    %c0_i32_1 = arith.constant 0 : i32
    %c0_i32_2 = arith.constant 0 : i32
    return %c0_i32, %c0_i32_0, %c0_i32_1 : i32, i32, i32
  }
  func.func @transform_2(%arg0: i32) -> (i32, i32, i32) {
    %c0_i32 = arith.constant 0 : i32
    %c0_i32_0 = arith.constant 0 : i32
    %c0_i32_1 = arith.constant 0 : i32
    %c0_i32_2 = arith.constant 0 : i32
    return %c0_i32, %c0_i32_0, %c0_i32_1 : i32, i32, i32
  }
  func.func @transform_3(%arg0: i32) -> (i32, i32, i32) {
    %c0_i32 = arith.constant 0 : i32
    %c0_i32_0 = arith.constant 0 : i32
    %c0_i32_1 = arith.constant 0 : i32
    %c0_i32_2 = arith.constant 0 : i32
    return %c0_i32, %c0_i32_0, %c0_i32_1 : i32, i32, i32
  }
  func.func @transform_4(%arg0: i32) -> (i32, i32, i32) {
    %c0_i32 = arith.constant 0 : i32
    %c0_i32_0 = arith.constant 0 : i32
    %c0_i32_1 = arith.constant 0 : i32
    %c0_i32_2 = arith.constant 0 : i32
    return %c0_i32, %c0_i32_0, %c0_i32_1 : i32, i32, i32
  }
  func.func @transform_5(%arg0: i32) -> (i32, i32, i32) {
    %c0_i32 = arith.constant 0 : i32
    %c0_i32_0 = arith.constant 0 : i32
    %c0_i32_1 = arith.constant 0 : i32
    %c0_i32_2 = arith.constant 0 : i32
    return %c0_i32, %c0_i32_0, %c0_i32_1 : i32, i32, i32
  }
  func.func @transform_6(%arg0: i32) -> (i32, i32) {
    %c0_i32 = arith.constant 0 : i32
    %c0_i32_0 = arith.constant 0 : i32
    return %arg0, %c0_i32 : i32, i32
  }
  func.func @transform_7(%arg0: i32) -> (i32, i32) {
    %c0_i32 = arith.constant 0 : i32
    %c0_i32_0 = arith.constant 0 : i32
    return %arg0, %c0_i32 : i32, i32
  }
}

</mosaic_0001>

<bundles_post_ra>
// kernel: tpu_custom_call.1
= control target key start
LH: loop header
LB: loop body
LE: loop exit
PB: predicated region body
PF: predicated region fallthrough
CT: control target
= control target key end

     0   :  { %13 = vsyncpa [#allocation3], 0  ;;  %v1469_v1 = vmov 0.0   ;;  %vm1470_vm0 = vmmov 0   ;;  %v32_v3 = vlaneseq  ;;  %s1880_s0 = inlined_call_operand.vmem [shape: f32[8,128], index: 0, kind: input, shape index: {}]   ;;  %s1881_s1 = inlined_call_operand.vmem [shape: f32[4,1,128], index: 1, kind: input, shape index: {}]   ;;  %s1882_s2 = inlined_call_operand.vmem [shape: bf16[4,128,64], index: 2, kind: input, shape index: {}]   ;;  %s1883_s3 = inlined_call_operand.vmem [shape: f32[4,1,64], index: 3, kind: input, shape index: {}]   ;;  %s1884_s4 = inlined_call_operand.vmem [shape: bf16[4,64,256], index: 4, kind: input, shape index: {}]   ;;  %s1885_s5 = inlined_call_operand.vmem [shape: f32[4,1,256], index: 5, kind: input, shape index: {}]   ;;  %s1886_s6 = inlined_call_operand.hbm [shape: f32[8,128], index: 6, kind: output, shape index: {0}]   ;;  %s1887_s7 = inlined_call_operand.hbm [shape: f32[8,128], index: 7, kind: output, shape index: {1}]  }
   0x1   :  { %v1325_v0 = vld [vmem:[%s1882_s2] sm:$0xff]   ;;  %1240 = vmatprep.subr.bf16.mxu0 %v1469_v1  ;;  %v1326_v2 = vld [vmem:[%s1882_s2 + $0x8] sm:$0xff]   ;;  %1256 = vmatprep.mubr.msk.bf16.mxu0 %vm1470_vm0, %v1469_v1  ;;  %v1327_v4 = vld [vmem:[%s1882_s2 + $0x10] sm:$0xff]  }
   0x2   :  { %1241 = vmatpush3.bf16.msra.mxu0 %v1325_v0  ;;  %v1328_v5 = vld [vmem:[%s1882_s2 + $0x18] sm:$0xff]   ;;  %v1531_v6 = vshrl.u32 %v32_v3, 7  ;;  %v1333_v7 = vld [vmem:[%s1884_s4 + $0x4] ss:$8 sps:$4 sm:$0xff]   ;;  %v1335_v8 = vld [vmem:[%s1884_s4] ss:$8 sps:$4 sm:$0xff]  }
   0x3   :  { %1242 = vmatprep.subr.bf16.mxu0 %v1469_v1  ;;  %v1336_v9 = vld [vmem:[%s1884_s4 + $0x14] ss:$8 sps:$4 sm:$0xff]   ;;  %216 = vmatprep.subr.bf16.mxu1 %v1333_v7  ;;  %v1329_v10 = vld [vmem:[%s1882_s2 + $0x20] sm:$0xff]   ;;  %v1338_v11 = vld [vmem:[%s1884_s4 + $0x10] ss:$8 sps:$4 sm:$0xff]  }
   0x4   :  { %217 = vmatpush1.bf16.msra.mxu1 %v1335_v8  ;;  %v1339_v12 = vld [vmem:[%s1884_s4 + $0x24] ss:$8 sps:$4 sm:$0xff]   ;;  %v1553_v13 = vsub.s32 0, %v1531_v6  ;;  %v1562_v15 = vld [vmem:[%s1881_s1] sm:$0x1]  ;;  %v1331_v16 = vld [vmem:[%s1882_s2 + $0x30] sm:$0xff]  }
   0x5   :  { %218 = vmatprep.subr.bf16.mxu1 %v1336_v9  ;;  %v1330_v14 = vld [vmem:[%s1882_s2 + $0x28] sm:$0xff]   ;;  %v1571_v17 = vld [vmem:[%s1880_s0] sm:$0xff]  ;;  %v1332_v19 = vld [vmem:[%s1882_s2 + $0x38] sm:$0xff]  }
   0x6   :  { %1243 = vmatpush3.bf16.msra.mxu0 %v1326_v2  ;;  %v35_v18 = vrot.slane %v1562_v15, %v1553_v13 }
   0x7   :  { %1244 = vmatprep.subr.bf16.mxu0 %v1469_v1 }
   0x8   :  { %219 = vmatpush1.bf16.msra.mxu1 %v1338_v11  ;;  %v1580_v20 = vmul.f32 %v35_v18, %v1571_v17 }
   0x9   :  { %220 = vmatprep.subr.bf16.mxu1 %v1339_v12 }
   0xa   :  { %1245 = vmatpush3.bf16.msra.mxu0 %v1327_v4  ;;  %v38_v21 = vpack.c.bf16 %v1580_v20, %v1580_v20 }
   0xb   :  { %1246 = vmatprep.subr.bf16.mxu0 %v1469_v1 }
   0xe   :  { %1247 = vmatpush3.bf16.msra.mxu0 %v1328_v5 }
   0xf   :  { %1248 = vmatprep.subr.bf16.mxu0 %v1469_v1 }
  0x12   :  { %1249 = vmatpush3.bf16.msra.mxu0 %v1329_v10 }
  0x13   :  { %1250 = vmatprep.subr.bf16.mxu0 %v1469_v1 }
  0x16   :  { %1251 = vmatpush3.bf16.msra.mxu0 %v1330_v14 }
  0x17   :  { %1252 = vmatprep.subr.bf16.mxu0 %v1469_v1 }
  0x1a   :  { %1253 = vmatpush3.bf16.msra.mxu0 %v1331_v16 }
  0x1b   :  { %1254 = vmatprep.subr.bf16.mxu0 %v1469_v1 }
  0x1e   :  { %1255 = vmatpush3.bf16.msra.mxu0 %v1332_v19 }
  0x21   :  { %1257 = vmatmul.mubr.bf16.vlgmr.msra.gmra.mrb[0].mxu0 %v38_v21 }
  0x22   :  { %14 = vsyncpa [#allocation5], 0  ;;  %v1341_v22 = vld [vmem:[%s1884_s4 + $0x20] ss:$8 sps:$4 sm:$0xff]   ;;  %v1342_v23 = vld [vmem:[%s1884_s4 + $0x34] ss:$8 sps:$4 sm:$0xff]  }
  0x23   :  { %221 = vmatpush1.bf16.msra.mxu1 %v1341_v22  ;;  %v1344_v24 = vld [vmem:[%s1884_s4 + $0x30] ss:$8 sps:$4 sm:$0xff]   ;;  %v1471_v25 = vmov 0   ;;  %v1051_v26 = vld [vmem:[%s1883_s3] ss:$0 sm:$0xff]  ;;  %vm212_vm1 = vcmask 523264  }
  0x24   :  { %222 = vmatprep.subr.bf16.mxu1 %v1342_v23  ;;  %248 = vmatprep.mubr.bf16.mxu1 %v1471_v25  ;;  %v1345_v34 = vld [vmem:[%s1882_s2 + $0x40] sm:$0xff]   ;;  %v1346_v35 = vld [vmem:[%s1882_s2 + $0x48] sm:$0xff]   ;;  %v1347_v36 = vld [vmem:[%s1882_s2 + $0x50] sm:$0xff]   ;;  %v30_v49 = vsub.f32 1.0, %v1562_v15  ;;  %v1641_v54 = vsub.s32 1, %v1531_v6 }
  0x25   :  { %497 = vmatprep.mubr.bf16.mxu0 %v1471_v25  ;;  %v1348_v37 = vld [vmem:[%s1882_s2 + $0x58] sm:$0xff]   ;;  %v1349_v38 = vld [vmem:[%s1882_s2 + $0x60] sm:$0xff]   ;;  %v1350_v39 = vld [vmem:[%s1882_s2 + $0x68] sm:$0xff]  }
  0x26   :  { %v1351_v40 = vld [vmem:[%s1882_s2 + $0x70] sm:$0xff]   ;;  %v1352_v41 = vld [vmem:[%s1882_s2 + $0x78] sm:$0xff]   ;;  %v160_v42 = vld [vmem:[%s1885_s5] sm:$0x3]  ;;  %v266_v50 = vrot.slane %v30_v49, %v1553_v13 }
  0x27   :  { %223 = vmatpush1.bf16.msra.mxu1 %v1344_v24  ;;  %v165_v43 = vrot.slane %v160_v42, %v1553_v13  ;;  %v169_v55 = vrot.slane %v160_v42, %v1641_v54  ;;  %v1648_v59 = vld [vmem:[%s1881_s1 + $0x1] sm:$0x1]  ;;  %v1355_v62 = vld [vmem:[%s1884_s4 + $0x44] ss:$8 sps:$4 sm:$0xff]   ;;  %v1358_v63 = vld [vmem:[%s1884_s4 + $0x54] ss:$8 sps:$4 sm:$0xff]  }
  0x28   :  { %1260 = vmatprep.subr.bf16.mxu1 %v1469_v1  ;;  %v1353_v61 = vld [vmem:[%s1884_s4 + $0x40] ss:$8 sps:$4 sm:$0xff]   ;;  %v281_v0 = vrot.slane %v1648_v59, %v1553_v13  ;;  %465 = vmatprep.subr.bf16.mxu0 %v1355_v62  ;;  %v1356_v3 = vld [vmem:[%s1884_s4 + $0x50] ss:$8 sps:$4 sm:$0xff]   ;;  %v1361_v5 = vld [vmem:[%s1884_s4 + $0x64] ss:$8 sps:$4 sm:$0xff]  }
  0x29   :  { %466 = vmatpush1.bf16.msra.mxu0 %v1353_v61  ;;  %v1359_v7 = vld [vmem:[%s1884_s4 + $0x60] ss:$8 sps:$4 sm:$0xff]   ;;  %v1364_v9 = vld [vmem:[%s1884_s4 + $0x74] ss:$8 sps:$4 sm:$0xff]   ;;  %v1362_v10 = vld [vmem:[%s1884_s4 + $0x70] ss:$8 sps:$4 sm:$0xff]  }
  0x2a   :  { %467 = vmatprep.subr.bf16.mxu0 %v1358_v63  ;;  %v1087_v11 = vld [vmem:[%s1883_s3 + $0x1] ss:$0 sm:$0xff]  ;;  %v1366_v21 = vld [vmem:[%s1882_s2 + $0x88] sm:$0xff]   ;;  %v1367_v22 = vld [vmem:[%s1882_s2 + $0x90] sm:$0xff]  }
  0x2b   :  { %v1368_v23 = vld [vmem:[%s1882_s2 + $0x98] sm:$0xff]   ;;  %v1369_v24 = vld [vmem:[%s1882_s2 + $0xa0] sm:$0xff]  }
  0x2c   :  { %v1132_v61 = vld [vmem:[%s1883_s3 + $0x2] ss:$0 sm:$0xff] }
  0x2d   :  { %468 = vmatpush1.bf16.msra.mxu0 %v1356_v3 }
  0x2e   :  { %469 = vmatprep.subr.bf16.mxu0 %v1361_v5  ;;  %v1385_v5 = vld [vmem:[%s1882_s2 + $0xc0] sm:$0xff]  }
  0x31   :  { %470 = vmatpush1.bf16.msra.mxu0 %v1359_v7  ;;  %v1387_v7 = vld [vmem:[%s1882_s2 + $0xd0] sm:$0xff]  }
  0x32   :  { %471 = vmatprep.subr.bf16.mxu0 %v1364_v9  ;;  %v1389_v9 = vld [vmem:[%s1882_s2 + $0xe0] sm:$0xff]  }
  0x35   :  { %472 = vmatpush1.bf16.msra.mxu0 %v1362_v10  ;;  %v1390_v10 = vld [vmem:[%s1882_s2 + $0xe8] sm:$0xff]  }
  0x36   :  { %1280 = vmatprep.subr.bf16.mxu0 %v1469_v1 }
  0xf4   :  { %v144_v27 = vpop.f32.mrb[0].mxu0 }
  0xf5   :  { %v145_v28 = vadd.f32 %v1051_v26, %v144_v27  ;;  %v1258_v29 = vpop.f32.mrb[1].mxu0  ;;  %v1370_v26 = vld [vmem:[%s1882_s2 + $0xa8] sm:$0xff]   ;;  %v1371_v27 = vld [vmem:[%s1882_s2 + $0xb0] sm:$0xff]  }
  0xf6   :  { %v147_v30 = vpop.f32.mrb[2].mxu0  ;;  %v1104_v29 = vld [vmem:[%s1885_s5 + $0x2] sm:$0x3] }
  0xf7   :  { %v150_v31 = vmax.f32 %v145_v28, 0.0  ;;  %v1259_v32 = vpop.f32.mrb[3].mxu0  ;;  %v1372_v28 = vld [vmem:[%s1882_s2 + $0xb8] sm:$0xff]   ;;  %v415_v30 = vrot.slane %v1104_v29, %v1553_v13 }
  0xf9   :  { %v151_v33 = vpack.c.bf16 %v150_v31, %v150_v31 }
  0xfb   :  { %1068 = vmatmul.mubr.msk.bf16.vlgmr.msra.gmra.mrb[0].mxu1 %vm212_vm1, %v151_v33 }
  0xfc   :  { %1276 = vmatprep.mubr.msk.bf16.mxu1 %vm1470_vm0, %v1469_v1  ;;  %1261 = vmatpush3.bf16.msra.mxu1 %v1345_v34 }
  0xfd   :  { %1262 = vmatprep.subr.bf16.mxu1 %v1469_v1 }
 0x100   :  { %1263 = vmatpush3.bf16.msra.mxu1 %v1346_v35 }
 0x101   :  { %1264 = vmatprep.subr.bf16.mxu1 %v1469_v1 }
 0x104   :  { %1265 = vmatpush3.bf16.msra.mxu1 %v1347_v36  ;;  %v276_v36 = vsub.f32 1.0, %v1648_v59  ;;  %v1384_v59 = vld [vmem:[%s1884_s4 + $0xb4] ss:$8 sps:$4 sm:$0xff]  }
 0x105   :  { %1266 = vmatprep.subr.bf16.mxu1 %v1469_v1 }
 0x108   :  { %1267 = vmatpush3.bf16.msra.mxu1 %v1348_v37  ;;  %v515_v37 = vrot.slane %v276_v36, %v1553_v13  ;;  %v1398_v36 = vld [vmem:[%s1884_s4 + $0xd4] ss:$8 sps:$4 sm:$0xff]  }
 0x109   :  { %1268 = vmatprep.subr.bf16.mxu1 %v1469_v1 }
 0x10c   :  { %1269 = vmatpush3.bf16.msra.mxu1 %v1349_v38 }
 0x10d   :  { %1270 = vmatprep.subr.bf16.mxu1 %v1469_v1 }
 0x110   :  { %1271 = vmatpush3.bf16.msra.mxu1 %v1350_v39 }
 0x111   :  { %1272 = vmatprep.subr.bf16.mxu1 %v1469_v1 }
 0x114   :  { %1273 = vmatpush3.bf16.msra.mxu1 %v1351_v40 }
 0x115   :  { %1274 = vmatprep.subr.bf16.mxu1 %v1469_v1 }
 0x118   :  { %1275 = vmatpush3.bf16.msra.mxu1 %v1352_v41  ;;  %v419_v41 = vrot.slane %v1104_v29, %v1641_v54 }
 0x1ce   :  { %v250_v44 = vpop.f32.mrb[0].mxu1 }
 0x1cf   :  { %v251_v45 = vadd.f32 %v250_v44, %v165_v43  ;;  %v252_v46 = vpop.f32.mrb[1].mxu1 }
 0x1d0   :  { %v254_v47 = vpop.f32.mrb[2].mxu1  ;;  %v253_v57 = vadd.f32 %v252_v46, %v169_v55  ;;  %v1381_v55 = vld [vmem:[%s1884_s4 + $0xa4] ss:$8 sps:$4 sm:$0xff]  }
 0x1d1   :  { %1405 = vtanh.f32 %v251_v45  ;;  %v255_v48 = vpop.f32.mrb[3].mxu1  ;;  %v1734_v45 = vld [vmem:[%s1881_s1 + $0x2] sm:$0x1] }
 0x1d2   :  { %v1373_v47 = vld [vmem:[%s1884_s4 + $0x80] ss:$8 sps:$4 sm:$0xff]   ;;  %v1375_v48 = vld [vmem:[%s1884_s4 + $0x84] ss:$8 sps:$4 sm:$0xff]  }
 0x1d3   :  { %714 = vmatprep.subr.bf16.mxu1 %v1375_v48 }
 0x1db   :  { %v1406_v51 = vpop.eup %1405 }
 0x1dc   :  { %v258_v52 = vmul.f32 1.442695, %v1406_v51  ;;  %v270_v53 = vmul.f32 %v1406_v51, %v266_v50  ;;  %v1378_v51 = vld [vmem:[%s1884_s4 + $0x94] ss:$8 sps:$4 sm:$0xff]  }
 0x1de   :  { %1407 = vpow2.f32 %v258_v52  ;;  %271 = vadd.xlane.f32.xlu0 %v270_v53  ;;  %v1376_v53 = vld [vmem:[%s1884_s4 + $0x90] ss:$8 sps:$4 sm:$0xff]  }
 0x1e8   :  { %v1408_v56 = vpop.eup %1407 }
 0x1e9   :  { %v260_v58 = vmul.f32 %v1408_v56, %v1571_v17 }
 0x1eb   :  { %v261_v60 = vadd.f32 %v260_v58, %v253_v57  ;;  %v1379_v58 = vld [vmem:[%s1884_s4 + $0xa0] ss:$8 sps:$4 sm:$0xff]  }
 0x1ed   :  { %v268_v2 = vmul.f32 %v266_v50, %v261_v60  ;;  %v530_v50 = vrot.slane %v1734_v45, %v1553_v13  ;;  %v1382_v60 = vld [vmem:[%s1884_s4 + $0xb0] ss:$8 sps:$4 sm:$0xff]  }
 0x1ef   :  { %v1665_v4 = vadd.f32 %v268_v2, %v1580_v20  ;;  %v1365_v20 = vld [vmem:[%s1882_s2 + $0x80] sm:$0xff]  }
 0x1f1   :  { %v1671_v6 = vmul.f32 %v281_v0, %v1665_v4 }
 0x1f3   :  { %v284_v8 = vpack.c.bf16 %v1671_v6, %v1671_v6 }
 0x1f5   :  { %1277 = vmatmul.mubr.bf16.vlgmr.msra.gmra.mrb[4].mxu1 %v284_v8  ;;  %v1388_v8 = vld [vmem:[%s1882_s2 + $0xd8] sm:$0xff]  }
 0x1f6   :  { %746 = vmatprep.mubr.bf16.mxu1 %v1471_v25  ;;  %715 = vmatpush1.bf16.msra.mxu1 %v1373_v47 }
 0x1f7   :  { %716 = vmatprep.subr.bf16.mxu1 %v1378_v51 }
 0x1fa   :  { %717 = vmatpush1.bf16.msra.mxu1 %v1376_v53  ;;  %v1194_v53 = vld [vmem:[%s1885_s5 + $0x6] sm:$0x3] }
 0x1fb   :  { %718 = vmatprep.subr.bf16.mxu1 %v1381_v55  ;;  %v913_v55 = vrot.slane %v1194_v53, %v1553_v13 }
 0x1fe   :  { %719 = vmatpush1.bf16.msra.mxu1 %v1379_v58 }
 0x1ff   :  { %720 = vmatprep.subr.bf16.mxu1 %v1384_v59 }
 0x202   :  { %721 = vmatpush1.bf16.msra.mxu1 %v1382_v60 }
 0x203   :  { %1300 = vmatprep.subr.bf16.mxu1 %v1469_v1 }
 0x2c8   :  { %v392_v12 = vpop.f32.mrb[4].mxu1 }
 0x2c9   :  { %v393_v14 = vadd.f32 %v1087_v11, %v392_v12  ;;  %v1278_v15 = vpop.f32.mrb[5].mxu1  ;;  %v1391_v11 = vld [vmem:[%s1882_s2 + $0xf0] sm:$0xff]   ;;  %v1392_v12 = vld [vmem:[%s1882_s2 + $0xf8] sm:$0xff]  }
 0x2ca   :  { %v395_v16 = vpop.f32.mrb[6].mxu1 }
 0x2cb   :  { %v398_v17 = vmax.f32 %v393_v14, 0.0  ;;  %v1279_v18 = vpop.f32.mrb[7].mxu1  ;;  %v1149_v14 = vld [vmem:[%s1885_s5 + $0x4] sm:$0x3] }
 0x2cc   :  { %v664_v15 = vrot.slane %v1149_v14, %v1553_v13 }
 0x2cd   :  { %v399_v19 = vpack.c.bf16 %v398_v17, %v398_v17 }
 0x2cf   :  { %1113 = vmatmul.mubr.msk.bf16.vlgmr.msra.gmra.mrb[4].mxu0 %vm212_vm1, %v399_v19 }
 0x2d0   :  { %1296 = vmatprep.mubr.msk.bf16.mxu0 %vm1470_vm0, %v1469_v1  ;;  %1281 = vmatpush3.bf16.msra.mxu0 %v1365_v20 }
 0x2d1   :  { %1282 = vmatprep.subr.bf16.mxu0 %v1469_v1 }
 0x2d4   :  { %1283 = vmatpush3.bf16.msra.mxu0 %v1366_v21  ;;  %v525_v21 = vsub.f32 1.0, %v1734_v45  ;;  %v1177_v45 = vld [vmem:[%s1883_s3 + $0x3] ss:$0 sm:$0xff]  ;;  %s1472_s3 = smov [#allocation2]  }
 0x2d5   :  { %1284 = vmatprep.subr.bf16.mxu0 %v1469_v1 }
 0x2d8   :  { %1285 = vmatpush3.bf16.msra.mxu0 %v1367_v22 }
 0x2d9   :  { %1286 = vmatprep.subr.bf16.mxu0 %v1469_v1 }
 0x2dc   :  { %1287 = vmatpush3.bf16.msra.mxu0 %v1368_v23 }
 0x2dd   :  { %1288 = vmatprep.subr.bf16.mxu0 %v1469_v1 }
 0x2e0   :  { %1289 = vmatpush3.bf16.msra.mxu0 %v1369_v24 }
 0x2e1   :  { %1290 = vmatprep.subr.bf16.mxu0 %v1469_v1 }
 0x2e4   :  { %1291 = vmatpush3.bf16.msra.mxu0 %v1370_v26  ;;  %v668_v26 = vrot.slane %v1149_v14, %v1641_v54 }
 0x2e5   :  { %1292 = vmatprep.subr.bf16.mxu0 %v1469_v1 }
 0x2e8   :  { %1293 = vmatpush3.bf16.msra.mxu0 %v1371_v27 }
 0x2e9   :  { %1294 = vmatprep.subr.bf16.mxu0 %v1469_v1 }
 0x2ec   :  { %1295 = vmatpush3.bf16.msra.mxu0 %v1372_v28 }
 0x3a2   :  { %v499_v31 = vpop.f32.mrb[4].mxu0 }
 0x3a3   :  { %v500_v32 = vadd.f32 %v499_v31, %v415_v30  ;;  %v501_v33 = vpop.f32.mrb[5].mxu0  ;;  %v1159_v30 = vld [vmem:[%s1881_s1 + $0x3] sm:$0x1] }
 0x3a4   :  { %v503_v34 = vpop.f32.mrb[6].mxu0  ;;  %v502_v43 = vadd.f32 %v501_v33, %v419_v41  ;;  %v1395_v33 = vld [vmem:[%s1884_s4 + $0xc4] ss:$8 sps:$4 sm:$0xff]  }
 0x3a5   :  { %1409 = vtanh.f32 %v500_v32  ;;  %v504_v35 = vpop.f32.mrb[7].mxu0  ;;  %v1393_v32 = vld [vmem:[%s1884_s4 + $0xc0] ss:$8 sps:$4 sm:$0xff]   ;;  %v779_v34 = vrot.slane %v1159_v30, %v1553_v13  ;;  %963 = vmatprep.subr.bf16.mxu0 %v1395_v33 }
 0x3af   :  { %v1410_v38 = vpop.eup %1409 }
 0x3b0   :  { %v507_v39 = vmul.f32 1.442695, %v1410_v38  ;;  %v519_v40 = vmul.f32 %v1410_v38, %v515_v37  ;;  %v1396_v38 = vld [vmem:[%s1884_s4 + $0xd0] ss:$8 sps:$4 sm:$0xff]  }
 0x3b2   :  { %1411 = vpow2.f32 %v507_v39  ;;  %520 = vadd.xlane.f32.xlu0 %v519_v40  ;;  %v1401_v39 = vld [vmem:[%s1884_s4 + $0xe4] ss:$8 sps:$4 sm:$0xff]  }
 0x3bc   :  { %v1412_v42 = vpop.eup %1411 }
 0x3bd   :  { %v509_v44 = vmul.f32 %v1412_v42, %v1665_v4  ;;  %v1399_v42 = vld [vmem:[%s1884_s4 + $0xe0] ss:$8 sps:$4 sm:$0xff]  }
 0x3bf   :  { %v510_v46 = vadd.f32 %v509_v44, %v502_v43  ;;  %v1404_v43 = vld [vmem:[%s1884_s4 + $0xf4] ss:$8 sps:$4 sm:$0xff]   ;;  %v1402_v44 = vld [vmem:[%s1884_s4 + $0xf0] ss:$8 sps:$4 sm:$0xff]   ;;  %s1029_s4 = sshll.u32 %s1472_s3, 4  ;;  %s1030_s4 = int_to_ptr.vmem [resolvable:$true] %s1029_s4 }
 0x3c0   :  { %s1421_s5 = scalar_lea.vmem %s1030_s4, 128  ;;  %p1426_p1 = scmp.lt.s32.totalorder %s1030_s4, %s1030_s4 }
 0x3c1   :  { %v517_v49 = vmul.f32 %v515_v37, %v510_v46  ;;  %p1422_p0 = scmp.ne.s32.totalorder %s1030_s4, %s1421_s5  ;;  %p1427_p2 = scmp.lt.s32.totalorder %s1421_s5, %s1421_s5 }
 0x3c3   :  { %v1748_v52 = vadd.f32 %v517_v49, %v1671_v6  ;;  %v1386_v6 = vld [vmem:[%s1882_s2 + $0xc8] sm:$0xff]   ;;  %p1428_p3 = por %p1427_p2, %p1426_p1 }
 0x3c5   :  { %v1757_v56 = vmul.f32 %v530_v50, %v1748_v52  ;;  %p1429_p4 = pnand %p1428_p3, %p1422_p0 }
 0x3c7   :  { %v533_v57 = vpack.c.bf16 %v1757_v56, %v1757_v56 }
 0x3c9   :  { %1297 = vmatmul.mubr.bf16.vlgmr.msra.gmra.mrb[8].mxu0 %v533_v57 }
 0x3ca   :  { %995 = vmatprep.mubr.bf16.mxu0 %v1471_v25  ;;  %964 = vmatpush1.bf16.msra.mxu0 %v1393_v32 }
 0x3cb   :  { %965 = vmatprep.subr.bf16.mxu0 %v1398_v36 }
 0x3ce   :  { %966 = vmatpush1.bf16.msra.mxu0 %v1396_v38 }
 0x3cf   :  { %967 = vmatprep.subr.bf16.mxu0 %v1401_v39 }
 0x3d2   :  { %968 = vmatpush1.bf16.msra.mxu0 %v1399_v42 }
 0x3d3   :  { %969 = vmatprep.subr.bf16.mxu0 %v1404_v43 }
 0x3d6   :  { %970 = vmatpush1.bf16.msra.mxu0 %v1402_v44 }
 0x49c   :  { %v641_v62 = vpop.f32.mrb[8].mxu0 }
 0x49d   :  { %v642_v63 = vadd.f32 %v1132_v61, %v641_v62  ;;  %v1298_v25 = vpop.f32.mrb[9].mxu0  ;;  %v774_v61 = vsub.f32 1.0, %v1159_v30 }
 0x49e   :  { %v644_v0 = vpop.f32.mrb[10].mxu0 }
 0x49f   :  { %v647_v2 = vmax.f32 %v642_v63, 0.0  ;;  %v1299_v3 = vpop.f32.mrb[11].mxu0  ;;  %v1013_v62 = vrot.slane %v774_v61, %v1553_v13 }
 0x4a1   :  { %v648_v4 = vpack.c.bf16 %v647_v2, %v647_v2  ;;  %v917_v2 = vrot.slane %v1194_v53, %v1641_v54 }
 0x4a3   :  { %1158 = vmatmul.mubr.msk.bf16.vlgmr.msra.gmra.mrb[8].mxu1 %vm212_vm1, %v648_v4 }
 0x4a4   :  { %1316 = vmatprep.mubr.msk.bf16.mxu1 %vm1470_vm0, %v1469_v1  ;;  %1301 = vmatpush3.bf16.msra.mxu1 %v1385_v5 }
 0x4a5   :  { %1302 = vmatprep.subr.bf16.mxu1 %v1469_v1 }
 0x4a8   :  { %1303 = vmatpush3.bf16.msra.mxu1 %v1386_v6 }
 0x4a9   :  { %1304 = vmatprep.subr.bf16.mxu1 %v1469_v1 }
 0x4ac   :  { %1305 = vmatpush3.bf16.msra.mxu1 %v1387_v7 }
 0x4ad   :  { %1306 = vmatprep.subr.bf16.mxu1 %v1469_v1 }
 0x4b0   :  { %1307 = vmatpush3.bf16.msra.mxu1 %v1388_v8 }
 0x4b1   :  { %1308 = vmatprep.subr.bf16.mxu1 %v1469_v1 }
 0x4b4   :  { %1309 = vmatpush3.bf16.msra.mxu1 %v1389_v9 }
 0x4b5   :  { %1310 = vmatprep.subr.bf16.mxu1 %v1469_v1 }
 0x4b8   :  { %1311 = vmatpush3.bf16.msra.mxu1 %v1390_v10 }
 0x4b9   :  { %1312 = vmatprep.subr.bf16.mxu1 %v1469_v1 }
 0x4bc   :  { %1313 = vmatpush3.bf16.msra.mxu1 %v1391_v11 }
 0x4bd   :  { %1314 = vmatprep.subr.bf16.mxu1 %v1469_v1  ;;  %v764_v1 = vrot.slane %v525_v21, %v1553_v13 }
 0x4c0   :  { %1315 = vmatpush3.bf16.msra.mxu1 %v1392_v12 }
 0x576   :  { %v748_v16 = vpop.f32.mrb[8].mxu1 }
 0x577   :  { %v749_v17 = vadd.f32 %v748_v16, %v664_v15  ;;  %v750_v18 = vpop.f32.mrb[9].mxu1 }
 0x578   :  { %v752_v19 = vpop.f32.mrb[10].mxu1  ;;  %v751_v28 = vadd.f32 %v750_v18, %v668_v26 }
 0x579   :  { %1413 = vtanh.f32 %v749_v17  ;;  %v753_v20 = vpop.f32.mrb[11].mxu1 }
 0x583   :  { %v1414_v22 = vpop.eup %1413 }
 0x584   :  { %v756_v23 = vmul.f32 1.442695, %v1414_v22  ;;  %v768_v24 = vmul.f32 %v1414_v22, %v764_v1 }
 0x586   :  { %1415 = vpow2.f32 %v756_v23  ;;  %769 = vadd.xlane.f32.xlu1 %v768_v24 }
 0x590   :  { %v1416_v27 = vpop.eup %1415 }
 0x591   :  { %v758_v29 = vmul.f32 %v1416_v27, %v1748_v52 }
 0x593   :  { %v759_v31 = vadd.f32 %v758_v29, %v751_v28 }
 0x595   :  { %v766_v35 = vmul.f32 %v764_v1, %v759_v31 }
 0x597   :  { %v767_v37 = vadd.f32 %v766_v35, %v1757_v56 }
 0x599   :  { %v781_v40 = vmul.f32 %v779_v34, %v767_v37 }
 0x59b   :  { %v782_v41 = vpack.c.bf16 %v781_v40, %v781_v40 }
 0x59d   :  { %1317 = vmatmul.mubr.bf16.vlgmr.msra.gmra.mrb[12].mxu1 %v782_v41 }
 0x670   :  { %v890_v46 = vpop.f32.mrb[12].mxu1 }
 0x671   :  { %v891_v47 = vadd.f32 %v1177_v45, %v890_v46  ;;  %v1318_v48 = vpop.f32.mrb[13].mxu1 }
 0x672   :  { %v893_v49 = vpop.f32.mrb[14].mxu1 }
 0x673   :  { %v896_v50 = vmax.f32 %v891_v47, 0.0  ;;  %v1319_v51 = vpop.f32.mrb[15].mxu1 }
 0x675   :  { %v897_v52 = vpack.c.bf16 %v896_v50, %v896_v50 }
 0x677   :  { %1203 = vmatmul.mubr.msk.bf16.vlgmr.msra.gmra.mrb[12].mxu0 %vm212_vm1, %v897_v52 }
 0x74a   :  { %v997_v56 = vpop.f32.mrb[12].mxu0 }
 0x74b   :  { %v998_v57 = vadd.f32 %v997_v56, %v913_v55  ;;  %v999_v58 = vpop.f32.mrb[13].mxu0 }
 0x74c   :  { %v1001_v59 = vpop.f32.mrb[14].mxu0  ;;  %v1000_v4 = vadd.f32 %v999_v58, %v917_v2 }
 0x74d   :  { %1417 = vtanh.f32 %v998_v57  ;;  %v1002_v60 = vpop.f32.mrb[15].mxu0 }
 0x757   :  { %v1418_v63 = vpop.eup %1417 }
 0x758   :  { %v1005_v25 = vmul.f32 1.442695, %v1418_v63  ;;  %v1017_v0 = vmul.f32 %v1418_v63, %v1013_v62 }
 0x75a   :  { %1419 = vpow2.f32 %v1005_v25  ;;  %1018 = vadd.xlane.f32.xlu1 %v1017_v0 }
 0x764   :  { %v1420_v3 = vpop.eup %1419 }
 0x765   :  { %v1007_v5 = vmul.f32 %v1420_v3, %v767_v37 }
 0x767   :  { %v1008_v6 = vadd.f32 %v1007_v5, %v1000_v4 }
 0x769   :  { %v1015_v7 = vmul.f32 %v1013_v62, %v1008_v6 }
 0x76b   :  { %v1016_v8 = vadd.f32 %v1015_v7, %v781_v40 }
 0x76d   :  { %1021 = vst [vmem:[#allocation2] sm:$0xff] %v1016_v8 }
 0x76e   :  { %1432 = shalt.err (!%p1429_p4)
}
 0x76f   :  { %s1433_s11 = scalar_lea.hbm %s1886_s6, 128 }
 0x770   :  { %p1434_p5 = scmp.ne.s32.totalorder %s1886_s6, %s1433_s11  ;;  %p1437_p6 = scmp.lt.u32.totalorder %s1433_s11, %s1886_s6 }
 0x772   :  { %p1439_p7 = pnand %p1437_p6, %p1434_p5 }
 0x774   :  { %1442 = shalt.err (!%p1439_p7)
}
 0x775   :  { %1032 = dma.vmem_to_hbm [thread:$0]  %s1030_s4, 128, %s1886_s6, [#allocation3]   ;;  %v272_v13 = vpop.xlane.xlu0 %271  ;;  %v770_v9 = vpop.xlane.xlu1 %769 }
 0x776   :  { %s1473_s17 = smov [#allocation4]  }
 0x777   :  { %s1039_s18 = sshll.u32 %s1473_s17, 4  ;;  %s1040_s18 = int_to_ptr.vmem [resolvable:$true] %s1039_s18 }
 0x778   :  { %s1443_s19 = scalar_lea.vmem %s1040_s18, 128  ;;  %p1448_p9 = scmp.lt.s32.totalorder %s1040_s18, %s1040_s18 }
 0x779   :  { %v521_v54 = vpop.xlane.xlu0 %520  ;;  %p1444_p8 = scmp.ne.s32.totalorder %s1040_s18, %s1443_s19  ;;  %p1449_p10 = scmp.lt.s32.totalorder %s1443_s19, %s1443_s19 }
 0x77a   :  { %v522_v10 = vadd.f32 %v521_v54, %v272_v13 }
 0x77b   :  { %p1450_p11 = por %p1449_p10, %p1448_p9 }
 0x77c   :  { %v771_v11 = vadd.f32 %v770_v9, %v522_v10 }
 0x77d   :  { %p1451_p12 = pnand %p1450_p11, %p1444_p8 }
 0x7e7   :  { %v1019_v12 = vpop.xlane.xlu1 %1018 }
 0x7e8   :  { %v1020_v14 = vadd.f32 %v1019_v12, %v771_v11 }
 0x7ea   :  { %1022 = vst [vmem:[#allocation4] sm:$0xff] %v1020_v14 }
 0x7eb   :  { %1454 = shalt.err (!%p1451_p12)
}
 0x7ec   :  { %s1455_s20 = scalar_lea.hbm %s1887_s7, 128 }
 0x7ed   :  { %p1456_p13 = scmp.ne.s32.totalorder %s1887_s7, %s1455_s20  ;;  %p1459_p0 = scmp.lt.u32.totalorder %s1455_s20, %s1887_s7 }
 0x7ef   :  { %p1461_p1 = pnand %p1459_p0, %p1456_p13 }
 0x7f1   :  { %1464 = shalt.err (!%p1461_p1)
}
 0x7f2   :  { %1042 = dma.vmem_to_hbm [thread:$0]  %s1040_s18, 128, %s1887_s7, [#allocation5]  }
 0x7f3   :  { %1465 = dma.done.wait [#allocation3], 128  }
 0x7f4   :  { %1466 = vsyncadd [#allocation3], 4294967168 }
 0x7f5   :  { %1467 = dma.done.wait [#allocation5], 128  }
 0x7f6   :  { %1468 = vsyncadd [#allocation5], 4294967168 }
 0x7f7   :  { %1049 = vsyncpa [#allocation3], 1 }
 0x7f8   :  { %1050 = vsyncpa [#allocation5], 1 }

</bundles_post_ra>
